<compile_context>
chip_gen: v6e
topology: v6e:2x2x1
jax: 0.10.0
libtpu: 0.0.40
codegen_flags: <defaults>
</compile_context>

<pallas_src>
import functools

import jax
import jax.numpy as jnp
import numpy as np
from jax.experimental import pallas as pl
from jax.experimental.pallas import tpu as pltpu


def _cshift(f, s):
    """Static circular shift along the last axis: out[..., p] = f[..., (p+s) % N]."""
    n = f.shape[-1]
    s = s % n
    if s == 0:
        return f
    return jnp.concatenate([f[..., s:], f[..., :s]], axis=-1)


def _space_attention_kernel(x_ref, row_ref, col_ref, w_ref, b_ref, o_ref, *, C, H, W):
    # x_ref block: (Bt, C, H*W) f32 (lane-dense last axis).
    # row_ref / col_ref: (1, H*W) int32 spatial indices for the boundary masks.
    # w_ref: (18,) f32 in SMEM (flattened (1, 2, 3, 3) conv weight); b_ref: (1,).
    x = x_ref[...].astype(jnp.float32)              # (Bt, C, HW)

    # Channel-wise mean / max (cross-sublane reduction over C).
    avg = jnp.sum(x, axis=1) * (1.0 / C)            # (Bt, HW)
    mx = jnp.max(x, axis=1)                         # (Bt, HW)

    # Boundary masks: only comparisons in-kernel; indices precomputed in wrapper.
    row = row_ref[...]                              # (1, HW)
    col = col_ref[...]                              # (1, HW)
    row_ok = {-1: row >= 1, 0: None, 1: row < (H - 1)}
    col_ok = {-1: col >= 1, 0: None, 1: col < (W - 1)}

    # Build the 9 tap masks once (shared by both input features).
    masks = {}
    for sy in (-1, 0, 1):
        for sx in (-1, 0, 1):
            rm, cm = row_ok[sy], col_ok[sx]
            if rm is not None and cm is not None:
                masks[(sy, sx)] = jnp.logical_and(rm, cm)
            elif rm is not None:
                masks[(sy, sx)] = rm
            else:
                masks[(sy, sx)] = cm                # may be None (center tap)

    # Hoist all conv scalars out of the tap loop (SMEM scalar reads up front).
    ws = [w_ref[i] for i in range(18)]
    bias = b_ref[0]

    # 3x3 conv, padding=1:
    #   conv = sum_t mask_t * shift_t( w_max[t]*mx + w_avg[t]*avg )
    # Per tap: form the 2-feature combo on unshifted data, then one lane shift
    # and one select.  Two accumulators break the serial VALU dependence chain.
    acc0 = jnp.zeros_like(mx)
    acc1 = jnp.zeros_like(mx)
    idx = 0
    for dy in range(3):
        for dx in range(3):
            sy, sx = dy - 1, dx - 1
            t = dy * 3 + dx
            combo = ws[t] * mx + ws[9 + t] * avg     # (Bt, HW)
            tap = _cshift(combo, sy * W + sx)        # tap[p] = combo[(p + sy*W + sx) mod HW]
            mask = masks[(sy, sx)]
            if mask is not None:
                tap = jnp.where(mask, tap, 0.0)
            if idx % 2 == 0:
                acc0 = acc0 + tap
            else:
                acc1 = acc1 + tap
            idx += 1
    conv = acc0 + acc1 + bias                        # (Bt, HW)

    # Sigmoid: exp -> EUP slot; exact divide to stay within 1e-5 of the reference.
    attn = 1.0 / (1.0 + jnp.exp(-conv))              # (Bt, HW)

    o_ref[...] = (attn[:, None, :] * x).astype(o_ref.dtype)


def _pick_batch_tile(B, per_image_bytes, target_bytes=2 * 1024 * 1024):
    """Largest batch tile (divisor of B) with block <= target; keep >=2 grid steps when possible."""
    cap = max(1, target_bytes // max(per_image_bytes, 1))
    divisors = [d for d in range(1, B + 1) if B % d == 0]
    fitting = [d for d in divisors if d <= cap] or [1]
    bt = max(fitting)
    if B > 1 and B // bt == 1:
        # Prefer at least 2 parallel grid steps so both v7x TensorCores get work.
        smaller = [d for d in fitting if d <= B // 2]
        if smaller:
            bt = max(smaller)
    return bt


def space_attention(x, weight, bias):
    """x: (B, C, H, W) f32; weight: (1, 2, 3, 3) f32; bias: (1,) f32."""
    B, C, H, W = x.shape
    HW = H * W
    x2 = x.reshape(B, C, HW)                               # contiguous merge -> free
    w_flat = weight.reshape(-1).astype(jnp.float32)        # (18,)
    b = bias.astype(jnp.float32)                           # (1,)

    # Spatial row/col index maps for the conv boundary masks (tiny, built once on host).
    lin = np.arange(HW, dtype=np.int32)
    row_ids = jnp.asarray((lin // W).reshape(1, HW))
    col_ids = jnp.asarray((lin % W).reshape(1, HW))

    per_image_bytes = C * HW * jnp.dtype(x.dtype).itemsize
    bt = _pick_batch_tile(B, per_image_bytes)
    grid = (B // bt,)

    kernel = functools.partial(_space_attention_kernel, C=C, H=H, W=W)
    out = pl.pallas_call(
        kernel,
        out_shape=jax.ShapeDtypeStruct((B, C, HW), x.dtype),
        grid_spec=pltpu.PrefetchScalarGridSpec(
            num_scalar_prefetch=0,
            grid=grid,
            in_specs=[
                pl.BlockSpec((bt, C, HW), lambda i: (i, 0, 0)),   # x (lane-dense)
                pl.BlockSpec((1, HW), lambda i: (0, 0)),          # row ids
                pl.BlockSpec((1, HW), lambda i: (0, 0)),          # col ids
                pl.BlockSpec(memory_space=pltpu.MemorySpace.SMEM),  # conv weights
                pl.BlockSpec(memory_space=pltpu.MemorySpace.SMEM),  # conv bias
            ],
            out_specs=pl.BlockSpec((bt, C, HW), lambda i: (i, 0, 0)),
        ),
        compiler_params=pltpu.CompilerParams(
            dimension_semantics=("parallel",),
        ),
    )(x2, row_ids, col_ids, w_flat, b)
    return out.reshape(B, C, H, W)


def _reference(x, weight, bias):
    avg = jnp.mean(x, axis=1, keepdims=True)
    mx = jnp.max(x, axis=1, keepdims=True)
    feat = jnp.concatenate([mx, avg], axis=1)              # (B, 2, H, W)
    conv = jax.lax.conv_general_dilated(
        feat, weight, window_strides=(1, 1), padding=((1, 1), (1, 1)),
        dimension_numbers=("NCHW", "OIHW", "NCHW"))
    attn = jax.nn.sigmoid(conv + bias.reshape(1, -1, 1, 1))
    return attn * x


if __name__ == "__main__":
    key = jax.random.PRNGKey(0)
    kx, kw, kb = jax.random.split(key, 3)

    B, C, H, W = 2, 4, 16, 16
    x = jax.random.normal(kx, (B, C, H, W), dtype=jnp.float32)

    # Deterministic init mimicking nn.Conv2d default (uniform in +-1/sqrt(fan_in)).
    fan_in = 2 * 3 * 3
    bound = 1.0 / (fan_in ** 0.5)
    weight = jax.random.uniform(kw, (1, 2, 3, 3), jnp.float32, -bound, bound)
    bias = jax.random.uniform(kb, (1,), jnp.float32, -bound, bound)

    out = space_attention(x, weight, bias)
    out = jax.block_until_ready(out)

    ref = _reference(x, weight, bias)
    assert out.shape == (B, C, H, W)
    assert jnp.allclose(out, ref, atol=1e-5, rtol=1e-5), (
        f"max abs err = {jnp.max(jnp.abs(out - ref))}")
    print("KERNEL_OK")
</pallas_src>

<mosaic_0001>
module attributes {stable_mosaic.version = 11 : i64} {
  func.func @_space_attention_kernel(%arg0: i32, %arg1: memref<1x4x256xf32, #tpu.memory_space<vmem>>, %arg2: memref<1x256xi32, #tpu.memory_space<vmem>>, %arg3: memref<1x256xi32, #tpu.memory_space<vmem>>, %arg4: memref<18xf32, #tpu.memory_space<smem>>, %arg5: memref<1xf32, #tpu.memory_space<smem>>, %arg6: memref<1x4x256xf32, #tpu.memory_space<vmem>>) attributes {dimension_semantics = [#tpu.dimension_semantics<parallel>], iteration_bounds = array<i64: 2>, scalar_prefetch = 0 : i64, scratch_operands = 0 : i64, tpu.core_type = #tpu.core_type<tc>, window_params = [{transform_indices = @transform_0, window_bounds = array<i64: 1, 4, 256>}, {pipeline_mode = #tpu.pipeline_mode<synchronous>, transform_indices = @transform_1, window_bounds = array<i64: 1, 256>}, {pipeline_mode = #tpu.pipeline_mode<synchronous>, transform_indices = @transform_2, window_bounds = array<i64: 1, 256>}, {transform_indices = @transform_3, window_bounds = array<i64: 18>}, {transform_indices = @transform_4, window_bounds = array<i64: 1>}, {transform_indices = @transform_5, window_bounds = array<i64: 1, 4, 256>}]} {
    %c0 = arith.constant 0 : index
    %c0_0 = arith.constant 0 : index
    %c0_1 = arith.constant 0 : index
    %0 = vector.load %arg1[%c0, %c0_0, %c0_1] : memref<1x4x256xf32, #tpu.memory_space<vmem>>, vector<1x4x256xf32>
    %cst = arith.constant dense<0.000000e+00> : vector<1x256xf32>
    %1 = vector.multi_reduction <add>, %0, %cst [1] : vector<1x4x256xf32> to vector<1x256xf32>
    %cst_2 = arith.constant 2.500000e-01 : f32
    %2 = vector.broadcast %cst_2 : f32 to vector<1x256xf32>
    %3 = arith.mulf %1, %2 : vector<1x256xf32>
    %cst_3 = arith.constant dense<0xFF800000> : vector<1x256xf32>
    %4 = vector.multi_reduction <maximumf>, %0, %cst_3 [1] : vector<1x4x256xf32> to vector<1x256xf32>
    %c0_4 = arith.constant 0 : index
    %c0_5 = arith.constant 0 : index
    %5 = vector.load %arg2[%c0_4, %c0_5] : memref<1x256xi32, #tpu.memory_space<vmem>>, vector<1x256xi32>
    %c0_6 = arith.constant 0 : index
    %c0_7 = arith.constant 0 : index
    %6 = vector.load %arg3[%c0_6, %c0_7] : memref<1x256xi32, #tpu.memory_space<vmem>>, vector<1x256xi32>
    %c1_i32 = arith.constant 1 : i32
    %7 = vector.broadcast %c1_i32 : i32 to vector<1x256xi32>
    %8 = arith.cmpi sge, %5, %7 : vector<1x256xi32>
    %c15_i32 = arith.constant 15 : i32
    %9 = vector.broadcast %c15_i32 : i32 to vector<1x256xi32>
    %10 = arith.cmpi slt, %5, %9 : vector<1x256xi32>
    %c1_i32_8 = arith.constant 1 : i32
    %11 = vector.broadcast %c1_i32_8 : i32 to vector<1x256xi32>
    %12 = arith.cmpi sge, %6, %11 : vector<1x256xi32>
    %c15_i32_9 = arith.constant 15 : i32
    %13 = vector.broadcast %c15_i32_9 : i32 to vector<1x256xi32>
    %14 = arith.cmpi slt, %6, %13 : vector<1x256xi32>
    %15 = arith.andi %8, %12 : vector<1x256xi1>
    %16 = arith.andi %8, %14 : vector<1x256xi1>
    %17 = arith.andi %10, %12 : vector<1x256xi1>
    %18 = arith.andi %10, %14 : vector<1x256xi1>
    %c0_10 = arith.constant 0 : index
    %19 = memref.load %arg4[%c0_10] : memref<18xf32, #tpu.memory_space<smem>>
    %c1 = arith.constant 1 : index
    %20 = memref.load %arg4[%c1] : memref<18xf32, #tpu.memory_space<smem>>
    %c2 = arith.constant 2 : index
    %21 = memref.load %arg4[%c2] : memref<18xf32, #tpu.memory_space<smem>>
    %c3 = arith.constant 3 : index
    %22 = memref.load %arg4[%c3] : memref<18xf32, #tpu.memory_space<smem>>
    %c4 = arith.constant 4 : index
    %23 = memref.load %arg4[%c4] : memref<18xf32, #tpu.memory_space<smem>>
    %c5 = arith.constant 5 : index
    %24 = memref.load %arg4[%c5] : memref<18xf32, #tpu.memory_space<smem>>
    %c6 = arith.constant 6 : index
    %25 = memref.load %arg4[%c6] : memref<18xf32, #tpu.memory_space<smem>>
    %c7 = arith.constant 7 : index
    %26 = memref.load %arg4[%c7] : memref<18xf32, #tpu.memory_space<smem>>
    %c8 = arith.constant 8 : index
    %27 = memref.load %arg4[%c8] : memref<18xf32, #tpu.memory_space<smem>>
    %c9 = arith.constant 9 : index
    %28 = memref.load %arg4[%c9] : memref<18xf32, #tpu.memory_space<smem>>
    %c10 = arith.constant 10 : index
    %29 = memref.load %arg4[%c10] : memref<18xf32, #tpu.memory_space<smem>>
    %c11 = arith.constant 11 : index
    %30 = memref.load %arg4[%c11] : memref<18xf32, #tpu.memory_space<smem>>
    %c12 = arith.constant 12 : index
    %31 = memref.load %arg4[%c12] : memref<18xf32, #tpu.memory_space<smem>>
    %c13 = arith.constant 13 : index
    %32 = memref.load %arg4[%c13] : memref<18xf32, #tpu.memory_space<smem>>
    %c14 = arith.constant 14 : index
    %33 = memref.load %arg4[%c14] : memref<18xf32, #tpu.memory_space<smem>>
    %c15 = arith.constant 15 : index
    %34 = memref.load %arg4[%c15] : memref<18xf32, #tpu.memory_space<smem>>
    %c16 = arith.constant 16 : index
    %35 = memref.load %arg4[%c16] : memref<18xf32, #tpu.memory_space<smem>>
    %c17 = arith.constant 17 : index
    %36 = memref.load %arg4[%c17] : memref<18xf32, #tpu.memory_space<smem>>
    %c0_11 = arith.constant 0 : index
    %37 = memref.load %arg5[%c0_11] : memref<1xf32, #tpu.memory_space<smem>>
    %cst_12 = arith.constant 0.000000e+00 : f32
    %38 = vector.broadcast %cst_12 : f32 to vector<1x256xf32>
    %cst_13 = arith.constant 0.000000e+00 : f32
    %39 = vector.broadcast %cst_13 : f32 to vector<1x256xf32>
    %40 = vector.broadcast %19 : f32 to vector<1x256xf32>
    %41 = arith.mulf %40, %4 : vector<1x256xf32>
    %42 = vector.broadcast %28 : f32 to vector<1x256xf32>
    %43 = arith.mulf %42, %3 : vector<1x256xf32>
    %44 = arith.addf %41, %43 : vector<1x256xf32>
    %45 = vector.extract_strided_slice %44 {offsets = [0, 239], sizes = [1, 17], strides = [1, 1]} : vector<1x256xf32> to vector<1x17xf32>
    %46 = vector.extract_strided_slice %44 {offsets = [0, 0], sizes = [1, 239], strides = [1, 1]} : vector<1x256xf32> to vector<1x239xf32>
    %47 = tpu.concatenate %45, %46 in 1 : vector<1x17xf32>, vector<1x239xf32> -> vector<1x256xf32>
    %cst_14 = arith.constant 0.000000e+00 : f32
    %48 = vector.broadcast %cst_14 : f32 to vector<1x256xf32>
    %49 = arith.select %15, %47, %48 : vector<1x256xi1>, vector<1x256xf32>
    %50 = arith.addf %38, %49 : vector<1x256xf32>
    %51 = vector.broadcast %20 : f32 to vector<1x256xf32>
    %52 = arith.mulf %51, %4 : vector<1x256xf32>
    %53 = vector.broadcast %29 : f32 to vector<1x256xf32>
    %54 = arith.mulf %53, %3 : vector<1x256xf32>
    %55 = arith.addf %52, %54 : vector<1x256xf32>
    %56 = vector.extract_strided_slice %55 {offsets = [0, 240], sizes = [1, 16], strides = [1, 1]} : vector<1x256xf32> to vector<1x16xf32>
    %57 = vector.extract_strided_slice %55 {offsets = [0, 0], sizes = [1, 240], strides = [1, 1]} : vector<1x256xf32> to vector<1x240xf32>
    %58 = tpu.concatenate %56, %57 in 1 : vector<1x16xf32>, vector<1x240xf32> -> vector<1x256xf32>
    %cst_15 = arith.constant 0.000000e+00 : f32
    %59 = vector.broadcast %cst_15 : f32 to vector<1x256xf32>
    %60 = arith.select %8, %58, %59 : vector<1x256xi1>, vector<1x256xf32>
    %61 = arith.addf %39, %60 : vector<1x256xf32>
    %62 = vector.broadcast %21 : f32 to vector<1x256xf32>
    %63 = arith.mulf %62, %4 : vector<1x256xf32>
    %64 = vector.broadcast %30 : f32 to vector<1x256xf32>
    %65 = arith.mulf %64, %3 : vector<1x256xf32>
    %66 = arith.addf %63, %65 : vector<1x256xf32>
    %67 = vector.extract_strided_slice %66 {offsets = [0, 241], sizes = [1, 15], strides = [1, 1]} : vector<1x256xf32> to vector<1x15xf32>
    %68 = vector.extract_strided_slice %66 {offsets = [0, 0], sizes = [1, 241], strides = [1, 1]} : vector<1x256xf32> to vector<1x241xf32>
    %69 = tpu.concatenate %67, %68 in 1 : vector<1x15xf32>, vector<1x241xf32> -> vector<1x256xf32>
    %cst_16 = arith.constant 0.000000e+00 : f32
    %70 = vector.broadcast %cst_16 : f32 to vector<1x256xf32>
    %71 = arith.select %16, %69, %70 : vector<1x256xi1>, vector<1x256xf32>
    %72 = arith.addf %50, %71 : vector<1x256xf32>
    %73 = vector.broadcast %22 : f32 to vector<1x256xf32>
    %74 = arith.mulf %73, %4 : vector<1x256xf32>
    %75 = vector.broadcast %31 : f32 to vector<1x256xf32>
    %76 = arith.mulf %75, %3 : vector<1x256xf32>
    %77 = arith.addf %74, %76 : vector<1x256xf32>
    %78 = vector.extract_strided_slice %77 {offsets = [0, 255], sizes = [1, 1], strides = [1, 1]} : vector<1x256xf32> to vector<1x1xf32>
    %79 = vector.extract_strided_slice %77 {offsets = [0, 0], sizes = [1, 255], strides = [1, 1]} : vector<1x256xf32> to vector<1x255xf32>
    %80 = tpu.concatenate %78, %79 in 1 : vector<1x1xf32>, vector<1x255xf32> -> vector<1x256xf32>
    %cst_17 = arith.constant 0.000000e+00 : f32
    %81 = vector.broadcast %cst_17 : f32 to vector<1x256xf32>
    %82 = arith.select %12, %80, %81 : vector<1x256xi1>, vector<1x256xf32>
    %83 = arith.addf %61, %82 : vector<1x256xf32>
    %84 = vector.broadcast %23 : f32 to vector<1x256xf32>
    %85 = arith.mulf %84, %4 : vector<1x256xf32>
    %86 = vector.broadcast %32 : f32 to vector<1x256xf32>
    %87 = arith.mulf %86, %3 : vector<1x256xf32>
    %88 = arith.addf %85, %87 : vector<1x256xf32>
    %89 = arith.addf %72, %88 : vector<1x256xf32>
    %90 = vector.broadcast %24 : f32 to vector<1x256xf32>
    %91 = arith.mulf %90, %4 : vector<1x256xf32>
    %92 = vector.broadcast %33 : f32 to vector<1x256xf32>
    %93 = arith.mulf %92, %3 : vector<1x256xf32>
    %94 = arith.addf %91, %93 : vector<1x256xf32>
    %95 = vector.extract_strided_slice %94 {offsets = [0, 1], sizes = [1, 255], strides = [1, 1]} : vector<1x256xf32> to vector<1x255xf32>
    %96 = vector.extract_strided_slice %94 {offsets = [0, 0], sizes = [1, 1], strides = [1, 1]} : vector<1x256xf32> to vector<1x1xf32>
    %97 = tpu.concatenate %95, %96 in 1 : vector<1x255xf32>, vector<1x1xf32> -> vector<1x256xf32>
    %cst_18 = arith.constant 0.000000e+00 : f32
    %98 = vector.broadcast %cst_18 : f32 to vector<1x256xf32>
    %99 = arith.select %14, %97, %98 : vector<1x256xi1>, vector<1x256xf32>
    %100 = arith.addf %83, %99 : vector<1x256xf32>
    %101 = vector.broadcast %25 : f32 to vector<1x256xf32>
    %102 = arith.mulf %101, %4 : vector<1x256xf32>
    %103 = vector.broadcast %34 : f32 to vector<1x256xf32>
    %104 = arith.mulf %103, %3 : vector<1x256xf32>
    %105 = arith.addf %102, %104 : vector<1x256xf32>
    %106 = vector.extract_strided_slice %105 {offsets = [0, 15], sizes = [1, 241], strides = [1, 1]} : vector<1x256xf32> to vector<1x241xf32>
    %107 = vector.extract_strided_slice %105 {offsets = [0, 0], sizes = [1, 15], strides = [1, 1]} : vector<1x256xf32> to vector<1x15xf32>
    %108 = tpu.concatenate %106, %107 in 1 : vector<1x241xf32>, vector<1x15xf32> -> vector<1x256xf32>
    %cst_19 = arith.constant 0.000000e+00 : f32
    %109 = vector.broadcast %cst_19 : f32 to vector<1x256xf32>
    %110 = arith.select %17, %108, %109 : vector<1x256xi1>, vector<1x256xf32>
    %111 = arith.addf %89, %110 : vector<1x256xf32>
    %112 = vector.broadcast %26 : f32 to vector<1x256xf32>
    %113 = arith.mulf %112, %4 : vector<1x256xf32>
    %114 = vector.broadcast %35 : f32 to vector<1x256xf32>
    %115 = arith.mulf %114, %3 : vector<1x256xf32>
    %116 = arith.addf %113, %115 : vector<1x256xf32>
    %117 = vector.extract_strided_slice %116 {offsets = [0, 16], sizes = [1, 240], strides = [1, 1]} : vector<1x256xf32> to vector<1x240xf32>
    %118 = vector.extract_strided_slice %116 {offsets = [0, 0], sizes = [1, 16], strides = [1, 1]} : vector<1x256xf32> to vector<1x16xf32>
    %119 = tpu.concatenate %117, %118 in 1 : vector<1x240xf32>, vector<1x16xf32> -> vector<1x256xf32>
    %cst_20 = arith.constant 0.000000e+00 : f32
    %120 = vector.broadcast %cst_20 : f32 to vector<1x256xf32>
    %121 = arith.select %10, %119, %120 : vector<1x256xi1>, vector<1x256xf32>
    %122 = arith.addf %100, %121 : vector<1x256xf32>
    %123 = vector.broadcast %27 : f32 to vector<1x256xf32>
    %124 = arith.mulf %123, %4 : vector<1x256xf32>
    %125 = vector.broadcast %36 : f32 to vector<1x256xf32>
    %126 = arith.mulf %125, %3 : vector<1x256xf32>
    %127 = arith.addf %124, %126 : vector<1x256xf32>
    %128 = vector.extract_strided_slice %127 {offsets = [0, 17], sizes = [1, 239], strides = [1, 1]} : vector<1x256xf32> to vector<1x239xf32>
    %129 = vector.extract_strided_slice %127 {offsets = [0, 0], sizes = [1, 17], strides = [1, 1]} : vector<1x256xf32> to vector<1x17xf32>
    %130 = tpu.concatenate %128, %129 in 1 : vector<1x239xf32>, vector<1x17xf32> -> vector<1x256xf32>
    %cst_21 = arith.constant 0.000000e+00 : f32
    %131 = vector.broadcast %cst_21 : f32 to vector<1x256xf32>
    %132 = arith.select %18, %130, %131 : vector<1x256xi1>, vector<1x256xf32>
    %133 = arith.addf %111, %132 : vector<1x256xf32>
    %134 = arith.addf %133, %122 : vector<1x256xf32>
    %135 = vector.broadcast %37 : f32 to vector<1x256xf32>
    %136 = arith.addf %134, %135 : vector<1x256xf32>
    %cst_22 = arith.constant 0.000000e+00 : f32
    %137 = vector.broadcast %cst_22 : f32 to vector<1x256xf32>
    %138 = arith.subf %137, %136 : vector<1x256xf32>
    %139 = math.exp %138 : vector<1x256xf32>
    %cst_23 = arith.constant 1.000000e+00 : f32
    %140 = vector.broadcast %cst_23 : f32 to vector<1x256xf32>
    %141 = arith.addf %140, %139 : vector<1x256xf32>
    %cst_24 = arith.constant 1.000000e+00 : f32
    %142 = vector.broadcast %cst_24 : f32 to vector<1x256xf32>
    %143 = arith.divf %142, %141 : vector<1x256xf32>
    %144 = vector.shape_cast %143 : vector<1x256xf32> to vector<1x1x256xf32>
    %145 = vector.broadcast %144 : vector<1x1x256xf32> to vector<1x4x256xf32>
    %146 = arith.mulf %145, %0 : vector<1x4x256xf32>
    %c0_25 = arith.constant 0 : index
    %c0_26 = arith.constant 0 : index
    %c0_27 = arith.constant 0 : index
    %147 = vector.load %arg6[%c0_25, %c0_26, %c0_27] : memref<1x4x256xf32, #tpu.memory_space<vmem>>, vector<1x4x256xf32>
    tpu.vector_store %arg6[%c0_25, %c0_26, %c0_27], %146 {strides = array<i32>} : memref<1x4x256xf32, #tpu.memory_space<vmem>>, vector<1x4x256xf32>,
    return
  }
  func.func @transform_0(%arg0: i32) -> (i32, i32, i32) {
    %c0_i32 = arith.constant 0 : i32
    %c0_i32_0 = arith.constant 0 : i32
    %c0_i32_1 = arith.constant 0 : i32
    return %arg0, %c0_i32, %c0_i32_0 : i32, i32, i32
  }
  func.func @transform_1(%arg0: i32) -> (i32, i32) {
    %c0_i32 = arith.constant 0 : i32
    %c0_i32_0 = arith.constant 0 : i32
    %c0_i32_1 = arith.constant 0 : i32
    return %c0_i32, %c0_i32_0 : i32, i32
  }
  func.func @transform_2(%arg0: i32) -> (i32, i32) {
    %c0_i32 = arith.constant 0 : i32
    %c0_i32_0 = arith.constant 0 : i32
    %c0_i32_1 = arith.constant 0 : i32
    return %c0_i32, %c0_i32_0 : i32, i32
  }
  func.func @transform_3(%arg0: i32) -> i32 {
    %c0_i32 = arith.constant 0 : i32
    %c0_i32_0 = arith.constant 0 : i32
    return %c0_i32 : i32
  }
  func.func @transform_4(%arg0: i32) -> i32 {
    %c0_i32 = arith.constant 0 : i32
    %c0_i32_0 = arith.constant 0 : i32
    return %c0_i32 : i32
  }
  func.func @transform_5(%arg0: i32) -> (i32, i32, i32) {
    %c0_i32 = arith.constant 0 : i32
    %c0_i32_0 = arith.constant 0 : i32
    %c0_i32_1 = arith.constant 0 : i32
    return %arg0, %c0_i32, %c0_i32_0 : i32, i32, i32
  }
}

</mosaic_0001>

<bundles_post_ra>
// kernel: tpu_custom_call.1
= control target key start
LH: loop header
LB: loop body
LE: loop exit
PB: predicated region body
PF: predicated region fallthrough
CT: control target
= control target key end

     0   :  { %s1406_s0 = inlined_call_operand.hbm [shape: f32[2,4,256], index: 0, kind: input, shape index: {}]   ;;  %s1407_s1 = inlined_call_operand.vmem [shape: s32[1,256], index: 1, kind: input, shape index: {}]   ;;  %s1408_s2 = inlined_call_operand.vmem [shape: s32[1,256], index: 2, kind: input, shape index: {}]   ;;  %s1409_s3 = inlined_call_operand.vmem [shape: f32[18], index: 3, kind: input, shape index: {}]   ;;  %s1410_s4 = inlined_call_operand.<no memory space> [shape: f32[1], index: 4, kind: input, shape index: {}]   ;;  %s1411_s5 = inlined_call_operand.hbm [shape: f32[2,4,256], index: 5, kind: output, shape index: {}]  }
   0x1   :  { %10 = sst [smem:[#allocation2]] %s1410_s4 }
   0x2   :  { %11 = vsyncpa [#allocation4], 0 }
   0x3   :  { %13 = vsyncpa [#allocation4 + $0x1], 0 }
   0x4   :  { %14 = vsyncpa [#allocation6], 0 }
   0x5   :  { %15 = vsyncpa [#allocation5], 0 }
   0x6   :  { %17 = vsyncpa [#allocation5 + $0x1], 0  ;;  %s1039_s20 = smov 0   ;;  %s1041_s21 = smov 0  }
   0x7   :  { %s1043_s22 = smov 0   ;;  %s1045_s23 = smov 0  }
   0x8 LB: > { %s1060_s4 = sadd.s32 4294967295, %s992_s23   ;;  %s775_s24 = sadd.s32 4294967294, %s992_s23   ;;  %s992_s23 = sphi %s1045_s23, %s1436_s23   ;;  %s988_s22 = sphi %s1043_s22, %s1435_s22   ;;  %s984_s21 = sphi %s1041_s21, %s1434_s21   ;;  %s980_s20 = sphi %s1039_s20, %s1433_s20  }
   0x9   : > { %p43_p0 = scmp.ne.s32.totalorder %s984_s21, %s980_s20  ;;  %p1412_p1 = scmp.eq.s32.totalorder %s1060_s4, 0 }
   0xa   : > { %p157_p3 = scmp.eq.s32.totalorder %s775_s24, 1  ;;  %p776_p5 = scmp.ge.s32.totalorder %s992_s23, 1 }
   0xb   : > { %p1069_p4 = por %p1412_p1, %p43_p0  ;;  %p164_p7 = scmp.lt.s32.totalorder %s992_s23, 3 }
   0xc   : > { %p1074_p6 = por %p157_p3, %p43_p0  ;;  %s183_s29 = sshll.u32 %s1409_s3, 4  ;;  %s184_s29 = int_to_ptr.vmem [resolvable:$true] %s183_s29 }
   0xd   : > { %s1416_s25 = scalar_select %p1069_p4, 1, 0 }
   0xe   : > { %s1417_s26 = scalar_select %p1074_p6, 1, 0 }
   0xf   : > { %p1082_p8 = pnand %p776_p5, %p164_p7  ;;  %s1090_s6 = sadd.s32 1, %s992_s23  }
  0x10   : > { %s27_s8 = ssub.s32 %s992_s23, %s1090_s6  ;;  %s30_s10 = sadd.s32 1, %s988_s22 }
  0x11   : > { %s1418_s30 = scalar_select %p1082_p8, 1, 0 }
  0x12   : > { %p818_p10 = pneg %p1082_p8  ;;  %p1100_p12 = scmp.eq.s32.totalorder %s27_s8, 0 }
  0x13   : > { %p37_p13 = scmp.ne.s32.totalorder %s988_s22, %s984_s21  ;;  %s881_s11 = scalar_lea.vmem %s184_s29, 16 }
  0x14   : > { %p1094_p11 = pnand %p818_p10, %p1412_p1  ;;  %p882_p0 = scmp.ne.s32.totalorder %s184_s29, %s881_s11 }
  0x15   : > { %p889_p9 = scmp.lt.s32.totalorder %s184_s29, %s184_s29  ;;  %p890_p2 = scmp.lt.s32.totalorder %s881_s11, %s881_s11 }
  0x16   : > { %p883_p3 = pneg %p1094_p11 }
  0x17   : > { %p891_p10 = por %p890_p2, %p889_p9 }
  0x18   : > { %p884_p5 = pnand %p883_p3, %p882_p0 }
  0x1a   : > { %p885_p7 = pneg %p884_p5 }
  0x1c   : > { %p892_p1 = pnand %p891_p10, %p885_p7 }
  0x1e   : > { %895 = shalt.err (!%p892_p1)
}
  0x1f   : > { %s994_s12 = smov [#allocation7]   ;;  %p38_p2 = scmp.eq.s32.totalorder %s992_s23, 0 }
  0x20   : > { %821 = dma.vmem_to_smem (!%p1094_p11), %s184_s29, 16, %s994_s12, [#allocation6]  }
  0x21   : > { %s1114_s13 = scalar_select %p1100_p12, %s988_s22, %s30_s10  }
  0x22   : > { %p1421_p1 = scmp.eq.s32.totalorder %s1060_s4, 1  ;;  %p831_p0 = scmp.lt.s32.totalorder %s992_s23, 2 }
  0x23   : > { %s197_s15 = sand.u32 1, %s988_s22   ;;  %p39_p3 = por %p38_p2, %p37_p13 }
  0x24   : > { %p1122_p9 = por %p1421_p1, %p37_p13  ;;  %s779_s16 = sshll.u32 %s197_s15, 3 }
  0x25   : > { %s808_s17 = sshll.u32 %s992_s23, 7  ;;  %s201_s27 = scalar_lea.vmem [#allocation3], %s779_s16 }
  0x26   : > { %s1422_s14 = scalar_select %p1122_p9, 1, 0 }
  0x27   : > { %s1135_s24 = scalar_lea.hbm %s1406_s0, %s808_s17  ;;  %s209_s28 = sshll.u32 %s201_s27, 4  ;;  %s210_s28 = int_to_ptr.vmem [resolvable:$true] %s209_s28 }
  0x28   : > { %p1137_p11 = pnand %p831_p0, %p39_p3  ;;  %s198_s7 = scalar_lea.sflag [#allocation4], %s197_s15 }
  0x29   : > { %s896_s8 = scalar_lea.hbm %s1135_s24, 128  ;;  %s901_s11 = scalar_lea.hbm %s1406_s0, 256 }
  0x2a   : > { %p897_p12 = scmp.ne.s32.totalorder %s1135_s24, %s896_s8  ;;  %p898_p13 = pneg %p1137_p11 }
  0x2b   : > { %p902_p10 = scmp.lt.s32.totalorder %s1135_s24, %s1406_s0  ;;  %p903_p2 = scmp.lt.s32.totalorder %s901_s11, %s896_s8 }
  0x2c   : > { %p899_p5 = pnand %p898_p13, %p897_p12 }
  0x2d   : > { %p904_p1 = por %p903_p2, %p902_p10 }
  0x2e   : > { %p900_p7 = pneg %p899_p5 }
  0x30   : > { %p905_p0 = pnand %p904_p1, %p900_p7 }
  0x32   : > { %908 = shalt.err (!%p905_p0)
}
  0x33   : > { %s909_s17 = scalar_lea.vmem %s210_s28, 128  ;;  %s995_s15 = smov [#allocation3]  }
  0x34   : > { %p910_p3 = scmp.ne.s32.totalorder %s210_s28, %s909_s17  ;;  %s914_s18 = sshll.u32 %s995_s15, 4  ;;  %s915_s18 = int_to_ptr.vmem [resolvable:$false] %s914_s18 }
  0x35   : > { %s916_s19 = scalar_lea.vmem %s915_s18, 256  ;;  %p917_p12 = scmp.lt.s32.totalorder %s210_s28, %s915_s18 }
  0x36   : > { %p912_p6 = pnand %p910_p3, %p898_p13  ;;  %p918_p5 = scmp.lt.s32.totalorder %s916_s19, %s909_s17 }
  0x38   : > { %p913_p9 = pneg %p912_p6  ;;  %p919_p4 = por %p918_p5, %p917_p12 }
  0x3a   : > { %p920_p8 = pnand %p919_p4, %p913_p9 }
  0x3c   : > { %923 = shalt.err (!%p920_p8)
}
  0x3d   : > { %825 = dma.hbm_to_vmem [thread:$0]  (!%p1137_p11), %s1135_s24, 128, %s210_s28, %s198_s7  }
  0x3e   : > { %p1424_p7 = scmp.ne.s32.totalorder %s1418_s30, 0 }
  0x3f   : > { %s1158_s27 = sand.u32 (!%p1424_p7), 1, %s984_s21   ;;  %p1425_p4 = scmp.ne.s32.totalorder (!%p1424_p7), %s1416_s25, 0 }
  0x40   : > { %218 = sbr.rel (%p1424_p7) target bundleno = 306 (0x132), region = 40  ;;  %s783_s8 = sshll.u32 (!%p1424_p7), %s1158_s27, 3 }
  0x41   : > { %s221_s9 = scalar_lea.sflag (!%p1424_p7), [#allocation4], %s1158_s27  ;;  %s224_s10 = scalar_lea.vmem (!%p1424_p7), [#allocation3], %s783_s8 }
  0x45   : > { %967 = dma.done.wait (%p1425_p4), %s221_s9, 128  }
  0x46   : > { %969 = vsyncadd (%p1425_p4), %s221_s9, 4294967168  ;;  %p1426_p6 = scmp.eq.s32.totalorder %s1060_s4, 0 }
  0x48   : > { %971 = dma.done.wait (%p1426_p6), [#allocation6], 16   ;;  %p1427_p8 = pmov %p1426_p6 }
  0x4a   : > { %973 = vsyncadd (%p1427_p8), [#allocation6], 4294967280 }
  0x4b   : > { %233 = sfence }
  0x4c   : > { %v1172_v0 = vld [vmem:[%s224_s10] sm:$0xff]  ;;  %vm260_vm0 = vcmask 1043456   ;;  %s1174_s30 = sld [smem:[#allocation7 + $0x2]]  ;;  %s996_s19 = smov 15   ;;  %vm411_vm1 = vcmask 121856   ;;  %vm335_vm2 = vcmask 138240  }
  0x4d   : > { %v261_v1 = vsel %vm260_vm0, %v1172_v0, 0.0  ;;  %v277_v2 = vsel %vm260_vm0, %v1172_v0, -inf  ;;  %s1178_s24 = sld [smem:[#allocation7 + $0xb]]  ;;  %v1182_v3 = vcombine.high %v1172_v0, %v1172_v0  ;;  %s997_s9 = smov 17   ;;  %vm513_vm3 = vcmask 1039360  }
  0x4e   : > { %v262_v4 = vrot.slane %v261_v1, 4  ;;  %v278_v5 = vrot.slane %v277_v2, 4  ;;  %s1184_s25 = sld [smem:[#allocation7]]  ;;  %vm373_vm4 = vcmask 130048   ;;  %vm551_vm8 = vcmask 924672   ;;  %p1430_p11 = scmp.ne.s32.totalorder %s1422_s14, 0 }
  0x4f   : > { %v268_v6 = vsel %vm260_vm0, %v1182_v3, 0.0  ;;  %v284_v7 = vsel %vm260_vm0, %v1182_v3, -inf  ;;  %s1188_s28 = sld [smem:[#allocation7 + $0x9]]  ;;  %vm449_vm9 = vcmask 7168   ;;  %vm589_vm12 = vcmask 916480  }
  0x50   : > { %v263_v8 = vadd.f32 %v262_v4, %v261_v1  ;;  %v279_v9 = vmax.f32 %v277_v2, %v278_v5  ;;  %v269_v10 = vrot.slane %v268_v6, 4  ;;  %v285_v11 = vrot.slane %v284_v7, 4  ;;  %s1190_s29 = sld [smem:[#allocation7 + $0x1]] }
  0x51   : > { %s1192_s7 = sld [smem:[#allocation7 + $0xa]]  ;;  %vm627_vm14 = vcmask 908288  }
  0x52   : > { %v264_v12 = vrot.slane %v263_v8, 2  ;;  %v280_v13 = vrot.slane %v279_v9, 2  ;;  %v270_v14 = vadd.f32 %v269_v10, %v268_v6  ;;  %s1194_s11 = sld [smem:[#allocation7 + $0x5]]  ;;  %v286_v15 = vmax.f32 %v284_v7, %v285_v11 }
  0x53   : > { %s1196_s12 = sld [smem:[#allocation7 + $0xe]]  ;;  %v396_v22 = vstv %s1174_s30  ;;  %v399_v24 = vstv %s1178_s24 }
  0x54   : > { %v265_v16 = vadd.f32 %v264_v12, %v263_v8  ;;  %v281_v17 = vmax.f32 %v279_v9, %v280_v13  ;;  %v271_v18 = vrot.slane %v270_v14, 2  ;;  %s1198_s16 = sld [smem:[#allocation7 + $0x3]]  ;;  %v287_v19 = vrot.slane %v286_v15, 2 }
  0x55   : > { %s1201_s17 = sld [smem:[#allocation7 + $0xc]]  ;;  %v320_v26 = vstv %s1184_s25  ;;  %v323_v33 = vstv %s1188_s28  ;;  %s998_s25 = smov 16  }
  0x56   : > { %v266_v20 = vrot.slane %v265_v16, 1  ;;  %v282_v21 = vrot.slane %v281_v17, 1  ;;  %v272_v23 = vadd.f32 %v271_v18, %v270_v14  ;;  %v288_v25 = vmax.f32 %v286_v15, %v287_v19  ;;  %s1206_s15 = sld [smem:[#allocation7 + $0x6]]  ;;  %s999_s28 = smov 127  }
  0x57   : > { %v358_v27 = vstv %s1190_s29  ;;  %s1211_s18 = sld [smem:[#allocation7 + $0xf]]  ;;  %v361_v34 = vstv %s1192_s7 }
  0x58   : > { %v267_v28 = vadd.f32 %v266_v20, %v265_v16  ;;  %v1208_v29 = vmax.f32 %v281_v17, %v282_v21  ;;  %v273_v30 = vrot.slane %v272_v23, 1  ;;  %v499_v31 = vstv %s1194_s11  ;;  %s1240_s10 = sld [smem:[#allocation7 + $0x7]]  ;;  %s1000_s11 = smov 1  }
  0x59   : > { %v289_v32 = vrot.slane %v288_v25, 1  ;;  %v502_v35 = vstv %s1196_s12  ;;  %s1242_s30 = sld [smem:[#allocation7 + $0x10]]  ;;  %s1001_s12 = smov 113  }
  0x5a   : > { %v1216_v36 = vmul.f32 0.25, %v267_v28  ;;  %v397_v37 = vmul.f32 %v396_v22, %v1208_v29  ;;  %v274_v38 = vadd.f32 %v273_v30, %v272_v23  ;;  %v321_v39 = vmul.f32 %v320_v26, %v1208_v29  ;;  %s1247_s24 = sld [smem:[#allocation7 + $0x4]] }
  0x5b   : > { %v359_v40 = vmul.f32 %v358_v27, %v1208_v29  ;;  %v500_v41 = vmul.f32 %v499_v31, %v1208_v29  ;;  %v434_v45 = vstv %s1198_s16  ;;  %v1229_v49 = vmax.f32 %v288_v25, %v289_v32  ;;  %s798_s29 = sld [smem:[#allocation7 + $0xd]] }
  0x5c   : > { %v400_v42 = vmul.f32 %v399_v24, %v1216_v36  ;;  %v324_v43 = vmul.f32 %v323_v33, %v1216_v36  ;;  %v362_v44 = vmul.f32 %v361_v34, %v1216_v36  ;;  %v503_v46 = vmul.f32 %v502_v35, %v1216_v36  ;;  %s1254_s7 = sld [smem:[#allocation7 + $0x8]] }
  0x5d   : > { %v1227_v48 = vmul.f32 0.25, %v274_v38  ;;  %v435_v52 = vmul.f32 %v434_v45, %v1208_v29  ;;  %v437_v53 = vstv %s1201_s17  ;;  %v537_v54 = vstv %s1206_s15  ;;  %s1260_s16 = sld [smem:[#allocation7 + $0x11]]  ;;  %s1002_s17 = smov 112  }
  0x5e   : > { %v402_v47 = vadd.f32 %v400_v42, %v397_v37  ;;  %v326_v50 = vadd.f32 %v324_v43, %v321_v39  ;;  %v364_v51 = vadd.f32 %v362_v44, %v359_v40  ;;  %v505_v55 = vadd.f32 %v503_v46, %v500_v41  ;;  %s1003_s15 = smov 111  }
  0x5f   : > { %v438_v56 = vmul.f32 %v437_v53, %v1216_v36  ;;  %v538_v57 = vmul.f32 %v537_v54, %v1208_v29  ;;  %v540_v58 = vstv %s1211_s18  ;;  %v398_v60 = vmul.f32 %v396_v22, %v1229_v49 }
  0x60   : > { %409 = vrot.lane.b32.xlu1 %v402_v47, %s996_s19  ;;  %333 = vrot.lane.b32.xlu0 %v326_v50, %s997_s9  ;;  %v541_v59 = vmul.f32 %v540_v58, %v1216_v36  ;;  %v401_v61 = vmul.f32 %v399_v24, %v1227_v48  ;;  %v322_v62 = vmul.f32 %v320_v26, %v1229_v49  ;;  %v575_v14 = vstv %s1240_s10 }
  0x61   : > { %v325_v63 = vmul.f32 %v323_v33, %v1227_v48  ;;  %v440_v1 = vadd.f32 %v438_v56, %v435_v52  ;;  %v501_v5 = vmul.f32 %v499_v31, %v1229_v49  ;;  %v504_v6 = vmul.f32 %v502_v35, %v1227_v48 }
  0x62   : > { %v543_v2 = vadd.f32 %v541_v59, %v538_v57  ;;  %v403_v4 = vadd.f32 %v401_v61, %v398_v60  ;;  %v360_v8 = vmul.f32 %v358_v27, %v1229_v49  ;;  %v363_v9 = vmul.f32 %v361_v34, %v1227_v48  ;;  %v1303_v57 = vld [vmem:[%s1407_s1] sm:$0x3] }
  0x63   : > { %v327_v7 = vadd.f32 %v325_v63, %v322_v62  ;;  %v539_v10 = vmul.f32 %v537_v54, %v1229_v49  ;;  %v542_v11 = vmul.f32 %v540_v58, %v1227_v48  ;;  %v506_v12 = vadd.f32 %v504_v6, %v501_v5  ;;  %v1308_v58 = vld [vmem:[%s1408_s2] sm:$0x3] }
  0x64   : > { %371 = vrot.lane.b32.xlu1 %v364_v51, %s998_s25  ;;  %509 = vrot.lane.b32.xlu0 %v505_v55, %s999_s28  ;;  %v436_v13 = vmul.f32 %v434_v45, %v1229_v49  ;;  %v578_v15 = vstv %s1242_s30  ;;  %v365_v16 = vadd.f32 %v363_v9, %v360_v8  ;;  %v439_v17 = vmul.f32 %v437_v53, %v1227_v48  ;;  %s319_s30 = sld [smem:[#allocation2]] }
  0x65   : > { %v472_v18 = vstv %s1247_s24  ;;  %v475_v19 = vstv %s798_s29  ;;  %v544_v24 = vadd.f32 %v542_v11, %v539_v10  ;;  %v577_v25 = vmul.f32 %v575_v14, %v1229_v49  ;;  %s809_s24 = sshll.u32 %s1060_s4, 7  ;;  %s1005_s4 = smov [#allocation8]  }
  0x66   : > { %v473_v20 = vmul.f32 %v472_v18, %v1208_v29  ;;  %v474_v21 = vmul.f32 %v472_v18, %v1229_v49  ;;  %v476_v22 = vmul.f32 %v475_v19, %v1216_v36  ;;  %v477_v23 = vmul.f32 %v475_v19, %v1227_v48 }
  0x67   : > { %v580_v26 = vmul.f32 %v578_v15, %v1227_v48  ;;  %v576_v27 = vmul.f32 %v575_v14, %v1208_v29  ;;  %v441_v31 = vadd.f32 %v439_v17, %v436_v13  ;;  %v579_v32 = vmul.f32 %v578_v15, %v1216_v36 }
  0x68   : > { %447 = vrot.lane.b32.xlu1 %v440_v1, %s1000_s11  ;;  %547 = vrot.lane.b32.xlu0 %v543_v2, %s1001_s12  ;;  %v1278_v28 = vadd.f32 %v476_v22, %v473_v20  ;;  %v1280_v30 = vadd.f32 %v477_v23, %v474_v21  ;;  %v613_v33 = vstv %s1254_s7  ;;  %v616_v34 = vstv %s1260_s16 }
  0x69   : > { %v582_v37 = vadd.f32 %v580_v26, %v577_v25  ;;  %v615_v38 = vmul.f32 %v613_v33, %v1229_v49  ;;  %v618_v39 = vmul.f32 %v616_v34, %v1227_v48  ;;  %v581_v40 = vadd.f32 %v579_v32, %v576_v27 }
  0x6a   : > { %v482_v35 = vcombine.low %v1278_v28, %v1280_v30  ;;  %v614_v41 = vmul.f32 %v613_v33, %v1208_v29  ;;  %v617_v42 = vmul.f32 %v616_v34, %v1216_v36  ;;  %v1004_v49 = vmov 1966171168  }
  0x6b   : > { %v620_v43 = vadd.f32 %v618_v39, %v615_v38  ;;  %v342_v50 = vunpack.c.l.s4 %v1004_v49  ;;  %v344_v51 = vlaneseq  ;;  %vm293_vm5 = vcmp.ge.s32.totalorder %v1303_v57, 1 }
  0x6c   : > { %405 = vrot.lane.b32.xlu1 %v403_v4, %s996_s19  ;;  %329 = vrot.lane.b32.xlu0 %v327_v7, %s997_s9  ;;  %v619_v44 = vadd.f32 %v617_v42, %v614_v41  ;;  %vm296_vm6 = vcmp.lt.s32.totalorder %v1308_v58, 15  ;;  %vm295_vm7 = vcmp.ge.s32.totalorder %v1308_v58, 1  ;;  %vm294_vm13 = vcmp.lt.s32.totalorder %v1303_v57, 15 }
  0x6d   : > { %v343_v29 = vunpack.c.0.s8 %v342_v50  ;;  %v1295_v54 = vshrl.u32 %v344_v51, 7  ;;  %vm1319_vm10 = vmand %vm293_vm5, %vm296_vm6 }
  0x6e   : > { %vm297_vm11 = vmand %vm293_vm5, %vm295_vm7 }
  0x6f   : > { %v1298_v36 = vsub.s32 %v343_v29, %v1295_v54  ;;  %vm299_vm15 = vmand %vm294_vm13, %vm295_vm7  ;;  %v663_v57 = vsub.s32 0, %v1295_v54 }
  0x70   : > { %511 = vrot.lane.b32.xlu1 %v506_v12, %s999_s28  ;;  %367 = vrot.lane.b32.xlu0 %v365_v16, %s998_s25  ;;  %vm300_vm0 = vmand %vm294_vm13, %vm296_vm6  ;;  %s255_s25 = scalar_lea.vmem [#allocation8], %s783_s8  ;;  %s928_s8 = sshll.u32 %s1005_s4, 4  ;;  %s929_s8 = int_to_ptr.vmem [resolvable:$false] %s928_s8 }
  0x71   : > { %s693_s28 = sshll.u32 %s255_s25, 4  ;;  %s694_s28 = int_to_ptr.vmem [resolvable:$true] %s693_s28 }
  0x72   : > { %s924_s16 = scalar_lea.vmem %s694_s28, 128  ;;  %p931_p2 = scmp.lt.s32.totalorder %s694_s28, %s929_s8 }
  0x73   : > { %p925_p9 = scmp.ne.s32.totalorder %s694_s28, %s924_s16 }
  0x74   : > { %549 = vrot.lane.b32.xlu1 %v544_v24, %s1001_s12  ;;  %443 = vrot.lane.b32.xlu0 %v441_v31, %s1000_s11  ;;  %v489_v24 = vrot.slane %v482_v35, %v1298_v36  ;;  %s691_s11 = scalar_lea.hbm %s1411_s5, %s809_s24  ;;  %s679_s12 = scalar_lea.sflag [#allocation5], %s1158_s27 }
  0x75   : > { %p926_p13 = pnand %p925_p9, %p1430_p11 }
  0x76   : > { %v496_v30 = vrot.slane %v489_v24, %v1298_v36 }
  0x77   : > { %p927_p10 = pneg %p926_p13 }
  0x78   : > { %587 = vrot.lane.b32.xlu1 %v582_v37, %s1002_s17  ;;  %585 = vrot.lane.b32.xlu0 %v581_v40, %s1002_s17  ;;  %s930_s17 = scalar_lea.vmem %s929_s8, 256 }
  0x79   : > { %p932_p1 = scmp.lt.s32.totalorder %s930_s17, %s924_s16 }
  0x7b   : > { %p933_p0 = por %p932_p1, %p931_p2 }
  0x7c   : > { %625 = vrot.lane.b32.xlu1 %v620_v43, %s1003_s15  ;;  %623 = vrot.lane.b32.xlu0 %v619_v44, %s1003_s15 }
  0x7d   : > { %p934_p3 = pnand %p933_p0, %p927_p10 }
  0xd2   : > { %v410_v45 = vpop.permute.xlu1 %409  ;;  %v334_v46 = vpop.permute.xlu0 %333 }
  0xd6   : > { %v372_v47 = vpop.permute.xlu1 %371  ;;  %v510_v48 = vpop.permute.xlu0 %509 }
  0xda   : > { %v448_v52 = vpop.permute.xlu1 %447  ;;  %v548_v53 = vpop.permute.xlu0 %547 }
  0xde   : > { %v406_v55 = vpop.permute.xlu1 %405  ;;  %v330_v56 = vpop.permute.xlu0 %329 }
  0xdf   : > { %v412_v59 = vsel %vm411_vm1, %v410_v45, %v406_v55  ;;  %v414_v60 = vsel %vm411_vm1, %v406_v55, %v410_v45  ;;  %v336_v61 = vsel %vm335_vm2, %v334_v46, %v330_v56  ;;  %v338_v62 = vsel %vm335_vm2, %v330_v56, %v334_v46 }
  0xe0   : > { %v416_v63 = vcombine.low %v414_v60, %v412_v59  ;;  %v340_v1 = vcombine.low %v338_v62, %v336_v61 }
  0xe2   : > { %v423_v2 = vrot.slane %v416_v63, %v1298_v36  ;;  %v347_v4 = vrot.slane %v340_v1, %v1298_v36  ;;  %v512_v5 = vpop.permute.xlu1 %511  ;;  %v368_v6 = vpop.permute.xlu0 %367 }
  0xe3   : > { %v514_v7 = vsel %vm513_vm3, %v510_v48, %v512_v5  ;;  %v517_v8 = vsel %vm513_vm3, %v512_v5, %v510_v48  ;;  %v374_v9 = vsel %vm373_vm4, %v372_v47, %v368_v6  ;;  %v376_v10 = vsel %vm373_vm4, %v368_v6, %v372_v47 }
  0xe4   : > { %v378_v11 = vcombine.low %v376_v10, %v374_v9  ;;  %v430_v13 = vrot.slane %v423_v2, %v1298_v36  ;;  %v354_v14 = vrot.slane %v347_v4, %v1298_v36  ;;  %v519_v15 = vcombine.low %v514_v7, %v517_v8 }
  0xe5   : > { %v652_v5 = vstv %s319_s30 }
  0xe6   : > { %v550_v16 = vpop.permute.xlu1 %549  ;;  %v444_v17 = vpop.permute.xlu0 %443  ;;  %v385_v18 = vrot.slane %v378_v11, %v1298_v36  ;;  %v432_v26 = vsel %vm1319_vm10, %v430_v13, 0.0  ;;  %v356_v27 = vsel %vm297_vm11, %v354_v14, 0.0  ;;  %v526_v31 = vrot.slane %v519_v15, %v1298_v36 }
  0xe7   : > { %v552_v19 = vsel %vm551_vm8, %v548_v53, %v550_v16  ;;  %v555_v20 = vsel %vm551_vm8, %v550_v16, %v548_v53  ;;  %v450_v21 = vsel %vm449_vm9, %v448_v52, %v444_v17  ;;  %v452_v23 = vsel %vm449_vm9, %v444_v17, %v448_v52 }
  0xe8   : > { %v557_v22 = vcombine.low %v552_v19, %v555_v20  ;;  %v454_v25 = vcombine.low %v452_v23, %v450_v21  ;;  %v392_v37 = vrot.slane %v385_v18, %v1298_v36  ;;  %v433_v41 = vadd.f32 %v432_v26, %v356_v27 }
  0xe9   : > { %v533_v42 = vrot.slane %v526_v31, %v1298_v36 }
  0xea   : > { %v564_v32 = vrot.slane %v557_v22, %v1298_v36  ;;  %v588_v33 = vpop.permute.xlu1 %587  ;;  %v586_v34 = vpop.permute.xlu0 %585  ;;  %v461_v38 = vrot.slane %v454_v25, %v1298_v36  ;;  %v394_v47 = vsel %vm293_vm5, %v392_v37, 0.0  ;;  %v498_v59 = vadd.f32 %v496_v30, %v433_v41 }
  0xeb   : > { %v590_v39 = vsel %vm589_vm12, %v586_v34, %v588_v33  ;;  %v593_v40 = vsel %vm589_vm12, %v588_v33, %v586_v34  ;;  %v535_v29 = vsel %vm296_vm6, %v533_v42, 0.0 }
  0xec   : > { %v595_v28 = vcombine.low %v590_v39, %v593_v40  ;;  %v468_v35 = vrot.slane %v461_v38, %v1298_v36  ;;  %v571_v43 = vrot.slane %v564_v32, %v1298_v36 }
  0xee   : > { %v602_v44 = vrot.slane %v595_v28, %v1298_v36  ;;  %v626_v45 = vpop.permute.xlu1 %625  ;;  %v624_v46 = vpop.permute.xlu0 %623  ;;  %v470_v48 = vsel %vm295_vm7, %v468_v35, 0.0  ;;  %v573_v55 = vsel %vm299_vm15, %v571_v43, 0.0 }
  0xef   : > { %v628_v49 = vsel %vm627_vm14, %v624_v46, %v626_v45  ;;  %v631_v50 = vsel %vm627_vm14, %v626_v45, %v624_v46  ;;  %v471_v51 = vadd.f32 %v470_v48, %v394_v47  ;;  %v574_v63 = vadd.f32 %v573_v55, %v498_v59 }
  0xf0   : > { %v609_v52 = vrot.slane %v602_v44, %v1298_v36  ;;  %v633_v53 = vcombine.low %v628_v49, %v631_v50 }
  0xf1   : > { %v536_v60 = vadd.f32 %v535_v29, %v471_v51 }
  0xf2   : > { %v640_v56 = vrot.slane %v633_v53, %v1298_v36  ;;  %v611_v61 = vsel %vm294_vm13, %v609_v52, 0.0 }
  0xf3   : > { %v612_v2 = vadd.f32 %v611_v61, %v536_v60 }
  0xf4   : > { %v647_v62 = vrot.slane %v640_v56, %v1298_v36  ;;  %v667_v36 = vsub.s32 1, %v1295_v54 }
  0xf6   : > { %v649_v1 = vsel %vm300_vm0, %v647_v62, 0.0 }
  0xf7   : > { %v650_v4 = vadd.f32 %v649_v1, %v574_v63 }
  0xf9   : > { %v651_v6 = vadd.f32 %v650_v4, %v612_v2 }
  0xfb   : > { %v653_v7 = vadd.f32 %v652_v5, %v651_v6 }
  0xfd   : > { %v654_v8 = vsub.f32 0.0, %v653_v7 }
  0xff   : > { %v655_v9 = vmul.f32 1.442695, %v654_v8 }
 0x101   : > { %877 = vpow2.f32 %v655_v9 }
 0x10e   : > { %v878_v58 = vpop.eup %877 }
 0x10f   : > { %v657_v10 = vadd.f32 1.0, %v878_v58 }
 0x111   : > { %879 = vrcp.f32 %v657_v10 }
 0x11e   : > { %v880_v11 = vpop.eup %879 }
 0x11f   : > { %v664_v12 = vrot.slane %v880_v11, %v663_v57  ;;  %v668_v13 = vrot.slane %v880_v11, %v667_v36 }
 0x121   : > { %v671_v14 = vmul.f32 %v664_v12, %v1172_v0  ;;  %v672_v15 = vmul.f32 %v668_v13, %v1182_v3 }
 0x123   : > { %v675_v16 = vcombine.low %v671_v14, %v672_v15 }
 0x125   : > { %677 = vst [vmem:[%s255_s25] sm:$0xff] %v675_v16 }
 0x126   : > { %937 = shalt.err (!%p934_p3)
}
 0x127   : > { %s938_s15 = scalar_lea.hbm %s691_s11, 128  ;;  %s942_s19 = scalar_lea.hbm %s1411_s5, 256 }
 0x128   : > { %p939_p12 = scmp.ne.s32.totalorder %s691_s11, %s938_s15  ;;  %p943_p4 = scmp.lt.s32.totalorder %s691_s11, %s1411_s5 }
 0x129   : > { %p944_p6 = scmp.lt.s32.totalorder %s942_s19, %s938_s15 }
 0x12a   : > { %p940_p5 = pnand %p939_p12, %p1430_p11 }
 0x12b   : > { %p945_p8 = por %p944_p6, %p943_p4 }
 0x12c   : > { %p941_p7 = pneg %p940_p5 }
 0x12e   : > { %p946_p9 = pnand %p945_p8, %p941_p7 }
 0x130   : > { %949 = shalt.err (!%p946_p9)
}
 0x131   : > { %816 = dma.vmem_to_hbm [thread:$0]  (%p1430_p11), %s694_s28, 128, %s691_s11, %s679_s12  }
 0x132 PF: > { %s705_s30 = sand.u32 1, %s980_s20   ;;  %p1431_p13 = scmp.ne.s32.totalorder %s1417_s26, 0 }
 0x133   : > { %p1432_p10 = scmp.ge.s32.totalorder %s992_s23, 2  ;;  %s706_s24 = scalar_lea.sflag [#allocation5], %s705_s30 }
 0x135   : > { %p827_p2 = pnand %p1432_p10, %p1431_p13 }
 0x137   : > { %p828_p1 = pneg %p827_p2 }
 0x139   : > { %975 = dma.done.wait (%p828_p1), %s706_s24, 128  }
 0x13a   : > { %977 = vsyncadd (%p828_p1), %s706_s24, 4294967168  ;;  %p20_p0 = scmp.ge.s32.totalorder %s1090_s6, 4   ;;  %s1433_s20 = smov %s984_s21 }
 0x13b   : > { %s1434_s21 = smov %s988_s22  ;;  %s1435_s22 = smov %s1114_s13 }
 0x13c   : > { %s1436_s23 = smov %s1090_s6  ;;  %22 = sbr.rel (!%p20_p0) target bundleno = 8 (0x8), region = 90 }
 0x141   :  { %711 = vsyncpa [#allocation4], 1 }
 0x142   :  { %713 = vsyncpa [#allocation4 + $0x1], 1 }
 0x143   :  { %714 = vsyncpa [#allocation5], 1 }
 0x144   :  { %716 = vsyncpa [#allocation5 + $0x1], 1 }
 0x145   :  { %717 = vsyncpa [#allocation6], 1 }
 0x146   :  { %719 = vsyncpa [#allocation6 + $0x1], 1 }

</bundles_post_ra>
